<compile_context>
chip_gen: v7x
topology: tpu7x:2x2x1
jax: 0.10.0
libtpu: 0.0.40
codegen_flags: <defaults>
</compile_context>

<pallas_src>
import functools

import jax
import jax.numpy as jnp
from jax.experimental import pallas as pl
from jax.experimental.pallas import tpu as pltpu


def _round_up(x: int, m: int) -> int:
    return ((x + m - 1) // m) * m


def _row_tile(batch: int, H: int, W: int, C: int, r: int, budget_bytes: int) -> int:
    """Rows of the input processed per grid step.

    VMEM per extra row (double-buffered, f32), including the lane padding to 128
    of both the (C, H_t, W) input block and the (H_t, r*W*r) fused-output block.
    """
    lane_in = _round_up(W, 128)
    lane_out = _round_up(r * W * r, 128)
    bytes_per_row = 2 * 4 * (C * lane_in + lane_out)
    ht = max(8, budget_bytes // bytes_per_row)
    ht = min(ht, H)
    if ht < H:
        ht = max(8, (ht // 8) * 8)          # keep the sublane (8) alignment when tiling
    # v7x megacore: make sure the (B, row_tiles) grid has >= 2 steps when possible.
    if batch * pl.cdiv(H, ht) < 2 and ht > 8:
        ht = max(8, _round_up(-(-ht // 2), 8))
    return int(ht)


@functools.partial(jax.jit, static_argnames=("factor", "b", "n"))
def upsample_spi(x_nchw, w1, w2, *, factor, b, n):
    """x_nchw: (B, C, H, W); w1: (C*r*r, C) = conv1.weight[..., 0, 0];
    w2: (C,) = conv2.weight squeezed.  Returns (b, n, 1, H*r, W*r)."""
    B, C, H, W = x_nchw.shape
    r = factor
    RR = r * r
    Wr = W * r            # width of one interleaved output row slab
    Wm = r * Wr           # merged (row-offset i, w*r+j) axis of the kernel output

    # ---- fuse conv1 ∘ PixelShuffle-channel-regroup ∘ conv2 into Wf (C, r*r) ----
    #   out[b, h*r+i, w*r+j] = sum_d Wf[d, i*r+j] * x[b, d, h, w]
    w1r = w1.reshape(C, RR, C)                      # [out-group c, subpixel k, in-channel d]
    wf = jnp.einsum("c,ckd->dk", w2, w1r)           # (C, r*r)

    # ---- fold the column interleave into the weights:
    #   G[i, d, w, w*r+j] = Wf[d, i*r+j]   (0 elsewhere)  -> a (W, W*r) scatter-matmul
    sel = (jnp.arange(Wr)[None, None, :]
           == (jnp.arange(W)[None, :, None] * r
               + jnp.arange(r)[:, None, None])).astype(x_nchw.dtype)      # (r, W, W*r) 0/1
    g = jnp.einsum("dij,jwc->idwc", wf.reshape(C, r, r), sel)             # (r, C, W, W*r)

    # ---- tile sizing / VMEM budget (padding-aware), scoped VMEM limit raised ----
    vmem_limit = 40 << 20
    g_block_bytes = r * C * _round_up(W, 8) * _round_up(Wr, 128) * 4      # resident weights
    tile_budget = max(vmem_limit - 2 * g_block_bytes - (8 << 20), 1 << 20)
    ht = _row_tile(B, H, W, C, r, tile_budget)
    grid = (B, pl.cdiv(H, ht))      # ragged last row tile is fine: rows are independent

    def kernel(g_ref, x_ref, o_ref):
        # g_ref: (r, C, W, W*r) resident fused weights
        # x_ref: (C, ht, W)     row tile of the input, native NCHW layout
        # o_ref: (ht, r*W*r)    lane-dense fused output tile
        for i in range(r):                        # r, C are tiny and static -> unrolled
            acc = jnp.dot(x_ref[0], g_ref[i, 0],
                          preferred_element_type=jnp.float32)
            for d in range(1, C):
                acc = acc + jnp.dot(x_ref[d], g_ref[i, d],
                                    preferred_element_type=jnp.float32)
            # already column-interleaved slab for row offset i
            o_ref[:, i * Wr:(i + 1) * Wr] = acc.astype(o_ref.dtype)

    z = pl.pallas_call(
        kernel,
        out_shape=jax.ShapeDtypeStruct((B, H, Wm), x_nchw.dtype),
        grid=grid,
        in_specs=[
            # fused + interleave-folded weights: constant index_map -> resident in VMEM
            pl.BlockSpec((r, C, W, Wr), lambda bi, ti: (0, 0, 0, 0)),
            # input row tile, consumed directly in NCHW (no transpose / pad pass)
            pl.BlockSpec((None, C, ht, W), lambda bi, ti: (bi, 0, ti, 0)),
        ],
        out_specs=pl.BlockSpec((None, ht, Wm), lambda bi, ti: (bi, ti, 0)),
        compiler_params=pltpu.CompilerParams(
            dimension_semantics=("parallel", "parallel"),
            vmem_limit_bytes=vmem_limit),
    )(g, x_nchw)

    # (B, H, r*W*r) -> (B, H*r, W*r) is a free contiguous view (row interleave done),
    # and so is the final torch-style view to (b, n, 1, H*r, W*r).
    return z.reshape(B, H * r, Wr).reshape(b, n, 1, H * r, Wr)


def _reference(x_nchw, w1, w2, *, factor, b, n):
    """Pure-JAX replica of the PyTorch forward (conv1 -> PixelShuffle -> conv2)."""
    B, C, H, W = x_nchw.shape
    r = factor
    hp = jax.lax.Precision.HIGHEST
    y1 = jnp.einsum("oc,bchw->bohw", w1, x_nchw, precision=hp)       # conv1
    y1 = y1.reshape(B, C, r, r, H, W)                                # (b, c, i, j, h, w)
    ps = jnp.transpose(y1, (0, 1, 4, 2, 5, 3)).reshape(B, C, H * r, W * r)
    out = jnp.einsum("c,bcyx->byx", w2, ps, precision=hp)            # conv2 (1 channel)
    return out.reshape(b, n, 1, H * r, W * r)


if __name__ == "__main__":
    # Small shapes consistent with the module: x is (b*n, channel, H, W)
    b, n = 2, 2
    channel, factor = 4, 2
    H = W = 16
    B = b * n

    key = jax.random.PRNGKey(0)
    kx, k1, k2 = jax.random.split(key, 3)
    x = jax.random.normal(kx, (B, channel, H, W), dtype=jnp.float32)
    # Conv2d(channel, channel*factor*factor, 1, bias=False).weight -> (C*r*r, C, 1, 1)
    w1 = jax.random.normal(k1, (channel * factor * factor, channel), dtype=jnp.float32) * 0.1
    # Conv2d(channel, 1, 1, bias=False).weight -> (1, C, 1, 1), squeezed to (C,)
    w2 = jax.random.normal(k2, (channel,), dtype=jnp.float32) * 0.1

    out = upsample_spi(x, w1, w2, factor=factor, b=b, n=n)
    out = jax.block_until_ready(out)

    ref = _reference(x, w1, w2, factor=factor, b=b, n=n)
    assert out.shape == (b, n, 1, H * factor, W * factor), out.shape
    assert jnp.allclose(out, ref, atol=1e-4, rtol=1e-4), float(jnp.max(jnp.abs(out - ref)))

    print("KERNEL_OK")
</pallas_src>

<mosaic_0001>
module attributes {stable_mosaic.version = 11 : i64} {
  func.func @kernel(%arg0: i32, %arg1: i32, %arg2: memref<2x4x16x32xf32, #tpu.memory_space<vmem>>, %arg3: memref<1x4x16x16xf32, #tpu.memory_space<vmem>>, %arg4: memref<1x16x64xf32, #tpu.memory_space<vmem>>) attributes {dimension_semantics = [#tpu.dimension_semantics<parallel>, #tpu.dimension_semantics<parallel>], iteration_bounds = array<i64: 4, 1>, scalar_prefetch = 0 : i64, scratch_operands = 0 : i64, tpu.core_type = #tpu.core_type<tc>, window_params = [{pipeline_mode = #tpu.pipeline_mode<synchronous>, transform_indices = @transform_0, window_bounds = array<i64: 2, 4, 16, 32>}, {transform_indices = @transform_1, window_bounds = array<i64: 1, 4, 16, 16>}, {transform_indices = @transform_2, window_bounds = array<i64: 1, 16, 64>}]} {
    %c0 = arith.constant 0 : index
    %c0_0 = arith.constant 0 : index
    %c0_1 = arith.constant 0 : index
    %c0_2 = arith.constant 0 : index
    %0 = vector.load %arg3[%c0, %c0_0, %c0_1, %c0_2] : memref<1x4x16x16xf32, #tpu.memory_space<vmem>>, vector<1x1x16x16xf32>
    %1 = vector.shape_cast %0 : vector<1x1x16x16xf32> to vector<16x16xf32>
    %c0_3 = arith.constant 0 : index
    %c0_4 = arith.constant 0 : index
    %c0_5 = arith.constant 0 : index
    %c0_6 = arith.constant 0 : index
    %2 = vector.load %arg2[%c0_3, %c0_4, %c0_5, %c0_6] : memref<2x4x16x32xf32, #tpu.memory_space<vmem>>, vector<1x1x16x32xf32>
    %3 = vector.shape_cast %2 : vector<1x1x16x32xf32> to vector<16x32xf32>
    %cst = arith.constant dense<0.000000e+00> : vector<16x32xf32>
    %4 = tpu.matmul %1, %3, %cst {dimension_numbers = #tpu.dot_dimension_numbers<[1], [0], [0], [1], [0, 0, 1, 1], [], []>} : vector<16x16xf32>, vector<16x32xf32>, vector<16x32xf32> -> vector<16x32xf32>
    %c0_7 = arith.constant 0 : index
    %c1 = arith.constant 1 : index
    %c0_8 = arith.constant 0 : index
    %c0_9 = arith.constant 0 : index
    %5 = vector.load %arg3[%c0_7, %c1, %c0_8, %c0_9] : memref<1x4x16x16xf32, #tpu.memory_space<vmem>>, vector<1x1x16x16xf32>
    %6 = vector.shape_cast %5 : vector<1x1x16x16xf32> to vector<16x16xf32>
    %c0_10 = arith.constant 0 : index
    %c1_11 = arith.constant 1 : index
    %c0_12 = arith.constant 0 : index
    %c0_13 = arith.constant 0 : index
    %7 = vector.load %arg2[%c0_10, %c1_11, %c0_12, %c0_13] : memref<2x4x16x32xf32, #tpu.memory_space<vmem>>, vector<1x1x16x32xf32>
    %8 = vector.shape_cast %7 : vector<1x1x16x32xf32> to vector<16x32xf32>
    %cst_14 = arith.constant dense<0.000000e+00> : vector<16x32xf32>
    %9 = tpu.matmul %6, %8, %cst_14 {dimension_numbers = #tpu.dot_dimension_numbers<[1], [0], [0], [1], [0, 0, 1, 1], [], []>} : vector<16x16xf32>, vector<16x32xf32>, vector<16x32xf32> -> vector<16x32xf32>
    %10 = arith.addf %4, %9 : vector<16x32xf32>
    %c0_15 = arith.constant 0 : index
    %c2 = arith.constant 2 : index
    %c0_16 = arith.constant 0 : index
    %c0_17 = arith.constant 0 : index
    %11 = vector.load %arg3[%c0_15, %c2, %c0_16, %c0_17] : memref<1x4x16x16xf32, #tpu.memory_space<vmem>>, vector<1x1x16x16xf32>
    %12 = vector.shape_cast %11 : vector<1x1x16x16xf32> to vector<16x16xf32>
    %c0_18 = arith.constant 0 : index
    %c2_19 = arith.constant 2 : index
    %c0_20 = arith.constant 0 : index
    %c0_21 = arith.constant 0 : index
    %13 = vector.load %arg2[%c0_18, %c2_19, %c0_20, %c0_21] : memref<2x4x16x32xf32, #tpu.memory_space<vmem>>, vector<1x1x16x32xf32>
    %14 = vector.shape_cast %13 : vector<1x1x16x32xf32> to vector<16x32xf32>
    %cst_22 = arith.constant dense<0.000000e+00> : vector<16x32xf32>
    %15 = tpu.matmul %12, %14, %cst_22 {dimension_numbers = #tpu.dot_dimension_numbers<[1], [0], [0], [1], [0, 0, 1, 1], [], []>} : vector<16x16xf32>, vector<16x32xf32>, vector<16x32xf32> -> vector<16x32xf32>
    %16 = arith.addf %10, %15 : vector<16x32xf32>
    %c0_23 = arith.constant 0 : index
    %c3 = arith.constant 3 : index
    %c0_24 = arith.constant 0 : index
    %c0_25 = arith.constant 0 : index
    %17 = vector.load %arg3[%c0_23, %c3, %c0_24, %c0_25] : memref<1x4x16x16xf32, #tpu.memory_space<vmem>>, vector<1x1x16x16xf32>
    %18 = vector.shape_cast %17 : vector<1x1x16x16xf32> to vector<16x16xf32>
    %c0_26 = arith.constant 0 : index
    %c3_27 = arith.constant 3 : index
    %c0_28 = arith.constant 0 : index
    %c0_29 = arith.constant 0 : index
    %19 = vector.load %arg2[%c0_26, %c3_27, %c0_28, %c0_29] : memref<2x4x16x32xf32, #tpu.memory_space<vmem>>, vector<1x1x16x32xf32>
    %20 = vector.shape_cast %19 : vector<1x1x16x32xf32> to vector<16x32xf32>
    %cst_30 = arith.constant dense<0.000000e+00> : vector<16x32xf32>
    %21 = tpu.matmul %18, %20, %cst_30 {dimension_numbers = #tpu.dot_dimension_numbers<[1], [0], [0], [1], [0, 0, 1, 1], [], []>} : vector<16x16xf32>, vector<16x32xf32>, vector<16x32xf32> -> vector<16x32xf32>
    %22 = arith.addf %16, %21 : vector<16x32xf32>
    %c0_31 = arith.constant 0 : index
    %c0_32 = arith.constant 0 : index
    %c0_33 = arith.constant 0 : index
    %23 = vector.load %arg4[%c0_31, %c0_32, %c0_33] : memref<1x16x64xf32, #tpu.memory_space<vmem>>, vector<1x16x32xf32>
    %24 = vector.shape_cast %23 : vector<1x16x32xf32> to vector<16x32xf32>
    %25 = vector.shape_cast %22 : vector<16x32xf32> to vector<1x16x32xf32>
    tpu.vector_store %arg4[%c0_31, %c0_32, %c0_33], %25 {strides = array<i32>} : memref<1x16x64xf32, #tpu.memory_space<vmem>>, vector<1x16x32xf32>,
    %c0_34 = arith.constant 0 : index
    %c0_35 = arith.constant 0 : index
    %c0_36 = arith.constant 0 : index
    %c0_37 = arith.constant 0 : index
    %26 = vector.load %arg3[%c0_34, %c0_35, %c0_36, %c0_37] : memref<1x4x16x16xf32, #tpu.memory_space<vmem>>, vector<1x1x16x16xf32>
    %27 = vector.shape_cast %26 : vector<1x1x16x16xf32> to vector<16x16xf32>
    %c1_38 = arith.constant 1 : index
    %c0_39 = arith.constant 0 : index
    %c0_40 = arith.constant 0 : index
    %c0_41 = arith.constant 0 : index
    %28 = vector.load %arg2[%c1_38, %c0_39, %c0_40, %c0_41] : memref<2x4x16x32xf32, #tpu.memory_space<vmem>>, vector<1x1x16x32xf32>
    %29 = vector.shape_cast %28 : vector<1x1x16x32xf32> to vector<16x32xf32>
    %cst_42 = arith.constant dense<0.000000e+00> : vector<16x32xf32>
    %30 = tpu.matmul %27, %29, %cst_42 {dimension_numbers = #tpu.dot_dimension_numbers<[1], [0], [0], [1], [0, 0, 1, 1], [], []>} : vector<16x16xf32>, vector<16x32xf32>, vector<16x32xf32> -> vector<16x32xf32>
    %c0_43 = arith.constant 0 : index
    %c1_44 = arith.constant 1 : index
    %c0_45 = arith.constant 0 : index
    %c0_46 = arith.constant 0 : index
    %31 = vector.load %arg3[%c0_43, %c1_44, %c0_45, %c0_46] : memref<1x4x16x16xf32, #tpu.memory_space<vmem>>, vector<1x1x16x16xf32>
    %32 = vector.shape_cast %31 : vector<1x1x16x16xf32> to vector<16x16xf32>
    %c1_47 = arith.constant 1 : index
    %c1_48 = arith.constant 1 : index
    %c0_49 = arith.constant 0 : index
    %c0_50 = arith.constant 0 : index
    %33 = vector.load %arg2[%c1_47, %c1_48, %c0_49, %c0_50] : memref<2x4x16x32xf32, #tpu.memory_space<vmem>>, vector<1x1x16x32xf32>
    %34 = vector.shape_cast %33 : vector<1x1x16x32xf32> to vector<16x32xf32>
    %cst_51 = arith.constant dense<0.000000e+00> : vector<16x32xf32>
    %35 = tpu.matmul %32, %34, %cst_51 {dimension_numbers = #tpu.dot_dimension_numbers<[1], [0], [0], [1], [0, 0, 1, 1], [], []>} : vector<16x16xf32>, vector<16x32xf32>, vector<16x32xf32> -> vector<16x32xf32>
    %36 = arith.addf %30, %35 : vector<16x32xf32>
    %c0_52 = arith.constant 0 : index
    %c2_53 = arith.constant 2 : index
    %c0_54 = arith.constant 0 : index
    %c0_55 = arith.constant 0 : index
    %37 = vector.load %arg3[%c0_52, %c2_53, %c0_54, %c0_55] : memref<1x4x16x16xf32, #tpu.memory_space<vmem>>, vector<1x1x16x16xf32>
    %38 = vector.shape_cast %37 : vector<1x1x16x16xf32> to vector<16x16xf32>
    %c1_56 = arith.constant 1 : index
    %c2_57 = arith.constant 2 : index
    %c0_58 = arith.constant 0 : index
    %c0_59 = arith.constant 0 : index
    %39 = vector.load %arg2[%c1_56, %c2_57, %c0_58, %c0_59] : memref<2x4x16x32xf32, #tpu.memory_space<vmem>>, vector<1x1x16x32xf32>
    %40 = vector.shape_cast %39 : vector<1x1x16x32xf32> to vector<16x32xf32>
    %cst_60 = arith.constant dense<0.000000e+00> : vector<16x32xf32>
    %41 = tpu.matmul %38, %40, %cst_60 {dimension_numbers = #tpu.dot_dimension_numbers<[1], [0], [0], [1], [0, 0, 1, 1], [], []>} : vector<16x16xf32>, vector<16x32xf32>, vector<16x32xf32> -> vector<16x32xf32>
    %42 = arith.addf %36, %41 : vector<16x32xf32>
    %c0_61 = arith.constant 0 : index
    %c3_62 = arith.constant 3 : index
    %c0_63 = arith.constant 0 : index
    %c0_64 = arith.constant 0 : index
    %43 = vector.load %arg3[%c0_61, %c3_62, %c0_63, %c0_64] : memref<1x4x16x16xf32, #tpu.memory_space<vmem>>, vector<1x1x16x16xf32>
    %44 = vector.shape_cast %43 : vector<1x1x16x16xf32> to vector<16x16xf32>
    %c1_65 = arith.constant 1 : index
    %c3_66 = arith.constant 3 : index
    %c0_67 = arith.constant 0 : index
    %c0_68 = arith.constant 0 : index
    %45 = vector.load %arg2[%c1_65, %c3_66, %c0_67, %c0_68] : memref<2x4x16x32xf32, #tpu.memory_space<vmem>>, vector<1x1x16x32xf32>
    %46 = vector.shape_cast %45 : vector<1x1x16x32xf32> to vector<16x32xf32>
    %cst_69 = arith.constant dense<0.000000e+00> : vector<16x32xf32>
    %47 = tpu.matmul %44, %46, %cst_69 {dimension_numbers = #tpu.dot_dimension_numbers<[1], [0], [0], [1], [0, 0, 1, 1], [], []>} : vector<16x16xf32>, vector<16x32xf32>, vector<16x32xf32> -> vector<16x32xf32>
    %48 = arith.addf %42, %47 : vector<16x32xf32>
    %c0_70 = arith.constant 0 : index
    %c0_71 = arith.constant 0 : index
    %c32 = arith.constant 32 : index
    %49 = vector.load %arg4[%c0_70, %c0_71, %c32] : memref<1x16x64xf32, #tpu.memory_space<vmem>>, vector<1x16x32xf32>
    %50 = vector.shape_cast %49 : vector<1x16x32xf32> to vector<16x32xf32>
    %51 = vector.shape_cast %48 : vector<16x32xf32> to vector<1x16x32xf32>
    tpu.vector_store %arg4[%c0_70, %c0_71, %c32], %51 {strides = array<i32>} : memref<1x16x64xf32, #tpu.memory_space<vmem>>, vector<1x16x32xf32>,
    return
  }
  func.func @transform_0(%arg0: i32, %arg1: i32) -> (i32, i32, i32, i32) {
    %c0_i32 = arith.constant 0 : i32
    %c0_i32_0 = arith.constant 0 : i32
    %c0_i32_1 = arith.constant 0 : i32
    %c0_i32_2 = arith.constant 0 : i32
    %c0_i32_3 = arith.constant 0 : i32
    return %c0_i32, %c0_i32_0, %c0_i32_1, %c0_i32_2 : i32, i32, i32, i32
  }
  func.func @transform_1(%arg0: i32, %arg1: i32) -> (i32, i32, i32, i32) {
    %c0_i32 = arith.constant 0 : i32
    %c0_i32_0 = arith.constant 0 : i32
    %c0_i32_1 = arith.constant 0 : i32
    return %arg0, %c0_i32, %arg1, %c0_i32_0 : i32, i32, i32, i32
  }
  func.func @transform_2(%arg0: i32, %arg1: i32) -> (i32, i32, i32) {
    %c0_i32 = arith.constant 0 : i32
    %c0_i32_0 = arith.constant 0 : i32
    return %arg0, %arg1, %c0_i32 : i32, i32, i32
  }
}

</mosaic_0001>

<bundles_post_ra>
// kernel: upsample_spi.1
= control target key start
LH: loop header
LB: loop body
LE: loop exit
PB: predicated region body
PF: predicated region fallthrough
CT: control target
= control target key end

     0   :  { %s1235_s9 = smov 0   ;;  %s1237_s10 = smov 0   ;;  %s1346_s0 = inlined_call_operand.vmem [shape: f32[2,4,16,32], index: 0, kind: input, shape index: {}]   ;;  %s1347_s1 = inlined_call_operand.vmem [shape: f32[4,4,16,16], index: 1, kind: input, shape index: {}]   ;;  %s1348_s2 = inlined_call_operand.vmem [shape: f32[4,16,64], index: 2, kind: output, shape index: {}]  }
   0x1   :  { %s1239_s11 = smov 0  }
   0x2 LB: > { %s24_s12 = sadd.s32 1, %s1213_s10  ;;  %p987_p0 = scmp.ge.s32.totalorder %s1217_s11, 1  ;;  %s1217_s11 = sphi %s1239_s11, %s12_s11   ;;  %s1213_s10 = sphi %s1237_s10, %s1350_s10   ;;  %s1209_s9 = sphi %s1235_s9, %s1349_s9  }
   0x3   : > { %p26_p1 = scmp.ge.s32.totalorder %s24_s12, 4  ;;  %p133_p2 = scmp.lt.s32.totalorder %s1217_s11, 5 }
   0x5   : > { %s1352_s12 = smov (%p26_p1, %s24_s12), 0  ;;  %p134_p3 = pnand %p987_p0, %p133_p2 }
   0x6   : > { %v1016_v0 = vld [vmem:[%s1346_s0 + $0x50] sm:$0xff] (!%p134_p3)  ;;  %v1017_v1 = vld [vmem:[%s1346_s0 + $0x58] sm:$0xff] (!%p134_p3)  ;;  %p164_p4 = scmp.lt.s32.totalorder (!%p134_p3), %s1209_s9, 3  ;;  %v1012_v2 = vld [vmem:[%s1346_s0 + $0x40] sm:$0xff] (!%p134_p3)  ;;  %vm193_vm0 = vcmask (!%p134_p3), 130048   ;;  %vm534_vm1 = vcmask (!%p134_p3), 261120  }
   0x7   : > { %137 = sbr.rel (%p134_p3) target bundleno = 376 (0x178), region = 28  ;;  %v1142_v3 = vpack.c.bf16 (!%p134_p3), %v1017_v1, %v1016_v0  ;;  %v1013_v4 = vld [vmem:[%s1346_s0 + $0x48] sm:$0xff] (!%p134_p3)  ;;  %v994_v6 = vld [vmem:[%s1346_s0 + $0x10] sm:$0xff] (!%p134_p3)  ;;  %v1024_v7 = vld [vmem:[%s1346_s0 + $0x60] sm:$0xff] (!%p134_p3)  ;;  %vm893_vm2 = vcmask (!%p134_p3), 523520  }
   0x8   : > { %v1146_v5 = vpack.c.bf16 (!%p134_p3), %v1013_v4, %v1012_v2  ;;  %v1025_v8 = vld [vmem:[%s1346_s0 + $0x68] sm:$0xff] (!%p134_p3)  ;;  %v995_v9 = vld [vmem:[%s1346_s0 + $0x18] sm:$0xff] (!%p134_p3)  ;;  %v185_v11 = vld [vmem:[%s1346_s0] sm:$0xff] (!%p134_p3) }
   0x9   : > { %1143 = vmatprep.subr.bf16.mxu1 (!%p134_p3), %v1142_v3  ;;  %v1126_v10 = vpack.c.bf16 (!%p134_p3), %v995_v9, %v994_v6  ;;  %v186_v12 = vld [vmem:[%s1346_s0 + $0x8] sm:$0xff] (!%p134_p3)  ;;  %v1002_v13 = vld [vmem:[%s1346_s0 + $0x20] sm:$0xff] (!%p134_p3)  ;;  %v1150_v18 = vpack.c.bf16 (!%p134_p3), %v1025_v8, %v1024_v7  ;;  %v1030_v21 = vld [vmem:[%s1346_s0 + $0x70] sm:$0xff] (!%p134_p3) }
   0xa   : > { %1145 = vmatpush3.bf16.msra.mxu1 (!%p134_p3), %v1142_v3  ;;  %v1003_v14 = vld [vmem:[%s1346_s0 + $0x28] sm:$0xff] (!%p134_p3)  ;;  %v1130_v19 = vpack.c.bf16 (!%p134_p3), %v186_v12, %v185_v11  ;;  %v1031_v22 = vld [vmem:[%s1346_s0 + $0x78] sm:$0xff] (!%p134_p3)  ;;  %v1008_v24 = vld [vmem:[%s1346_s0 + $0x30] sm:$0xff] (!%p134_p3) }
   0xb   : > { %1147 = vmatprep.subr.bf16.mxu1 (!%p134_p3), %v1146_v5  ;;  %1127 = vmatprep.subr.bf16.mxu0 (!%p134_p3), %v1126_v10  ;;  %v1134_v20 = vpack.c.bf16 (!%p134_p3), %v1003_v14, %v1002_v13  ;;  %v1009_v25 = vld [vmem:[%s1346_s0 + $0x38] sm:$0xff] (!%p134_p3)  ;;  %v1154_v27 = vpack.c.bf16 (!%p134_p3), %v1031_v22, %v1030_v21 }
   0xc   : > { %1129 = vmatpush3.bf16.msra.mxu0 (!%p134_p3), %v1126_v10  ;;  %v1138_v28 = vpack.c.bf16 (!%p134_p3), %v1009_v25, %v1008_v24 }
   0xd   : > { %1131 = vmatprep.subr.bf16.mxu0 (!%p134_p3), %v1130_v19 }
   0xe   : > { %s1354_s9 = smov (!%p164_p4, %s1209_s9), 3 }
   0xf   : > { %s1036_s29 = sshll.u32 %s1354_s9, 6  ;;  %s1037_s25 = sshll.u32 %s1354_s9, 4 }
  0x10   : > { %s1289_s8 = scalar_lea.vmem %s1347_s1, %s1036_s29  ;;  %s181_s28 = scalar_lea.vmem %s1348_s2, %s1037_s25 }
  0x11   : > { %v1014_v15 = vld [vmem:[%s1289_s8 + $0x10] sm:$0xff]  ;;  %v1015_v16 = vld [vmem:[%s1289_s8 + $0x18] sm:$0xff]  ;;  %v537_v17 = vld [vmem:[%s1289_s8] sm:$0xff]  ;;  %s1219_s29 = smov 32  }
  0x12   : > { %1102 = vmatprep.mubr.msk.f32.mxu1 %vm193_vm0, %v1014_v15  ;;  %1074 = vmatprep.mubr.msk.f32.mxu0 %vm193_vm0, %v1014_v15  ;;  %v538_v23 = vld [vmem:[%s1289_s8 + $0x8] sm:$0xff]  ;;  %v1022_v26 = vld [vmem:[%s1289_s8 + $0x20] sm:$0xff]  ;;  %v1028_v30 = vld [vmem:[%s1289_s8 + $0x30] sm:$0xff] }
  0x13   : > { %1103 = vmatmul.mubr.msk.f32.vlgmr.msra.gmra.mrb[0].mxu1 %vm193_vm0, %v1015_v16  ;;  %1075 = vmatmul.mubr.msk.f32.vlgmr.msra.gmra.mrb[0].mxu0 %vm193_vm0, %v1015_v16  ;;  %v1023_v29 = vld [vmem:[%s1289_s8 + $0x28] sm:$0xff]  ;;  %v1029_v31 = vld [vmem:[%s1289_s8 + $0x38] sm:$0xff] }
  0x14   : > { %1149 = vmatpush3.bf16.msra.mxu1 %v1146_v5  ;;  %1109 = vmatprep.mubr.msk.f32.mxu1 %vm193_vm0, %v537_v17 }
  0x15   : > { %1151 = vmatprep.subr.bf16.mxu1 %v1150_v18  ;;  %1081 = vmatprep.mubr.msk.f32.mxu0 %vm193_vm0, %v537_v17 }
  0x16   : > { %1133 = vmatpush3.bf16.msra.mxu0 %v1130_v19 }
  0x17   : > { %1135 = vmatprep.subr.bf16.mxu0 %v1134_v20 }
  0x1b   : > { %1110 = vmatmul.mubr.msk.f32.vlgmr.msra.gmra.mrb[0].mxu1 %vm193_vm0, %v538_v23  ;;  %1082 = vmatmul.mubr.msk.f32.vlgmr.msra.gmra.mrb[0].mxu0 %vm193_vm0, %v538_v23 }
  0x1c   : > { %1153 = vmatpush3.bf16.msra.mxu1 %v1150_v18  ;;  %1116 = vmatprep.mubr.msk.f32.mxu1 %vm193_vm0, %v1022_v26 }
  0x1d   : > { %1155 = vmatprep.subr.bf16.mxu1 %v1154_v27  ;;  %1137 = vmatpush3.bf16.msra.mxu0 %v1134_v20 }
  0x1e   : > { %1088 = vmatprep.mubr.msk.f32.mxu0 %vm193_vm0, %v1022_v26  ;;  %1139 = vmatprep.subr.bf16.mxu0 %v1138_v28 }
  0x23   : > { %1117 = vmatmul.mubr.msk.f32.vlgmr.msra.gmra.mrb[0].mxu1 %vm193_vm0, %v1023_v29  ;;  %1089 = vmatmul.mubr.msk.f32.vlgmr.msra.gmra.mrb[0].mxu0 %vm193_vm0, %v1023_v29 }
  0x24   : > { %1157 = vmatpush3.bf16.msra.mxu1 %v1154_v27  ;;  %1123 = vmatprep.mubr.msk.f32.mxu1 %vm193_vm0, %v1028_v30 }
  0x25   : > { %1141 = vmatpush3.bf16.msra.mxu0 %v1138_v28  ;;  %1095 = vmatprep.mubr.msk.f32.mxu0 %vm193_vm0, %v1028_v30 }
  0x2b   : > { %1124 = vmatmul.mubr.msk.f32.vlgmr.msra.gmra.mrb[0].mxu1 %vm193_vm0, %v1029_v31  ;;  %1096 = vmatmul.mubr.msk.f32.vlgmr.msra.gmra.mrb[0].mxu0 %vm193_vm0, %v1029_v31 }
  0xfe   : > { %v1125_v32 = vpop.f32.mrb[0].mxu1  ;;  %v1097_v34 = vpop.f32.mrb[0].mxu0 }
  0xff   : > { %v874_v33 = vpop.f32.mrb[1].mxu1  ;;  %536 = vst.msk [vmem:[%s181_s28 + $0x8] sm:$0xff] %vm534_vm1, %v1097_v34  ;;  %v523_v35 = vpop.f32.mrb[1].mxu0 }
 0x100   : > { %887 = vrot.lane.b32.xlu0 %v874_v33, %s1219_s29  ;;  %535 = vst.msk [vmem:[%s181_s28] sm:$0xff] %vm534_vm1, %v523_v35 }
 0x104   : > { %889 = vrot.lane.b32.xlu0 %v1125_v32, %s1219_s29 }
 0x172   : > { %v888_v36 = vpop.permute.xlu0 %887 }
 0x173   : > { %894 = vst.msk [vmem:[%s181_s28] sm:$0xff] %vm893_vm2, %v888_v36 }
 0x176   : > { %v890_v37 = vpop.permute.xlu0 %889 }
 0x177   : > { %895 = vst.msk [vmem:[%s181_s28 + $0x8] sm:$0xff] %vm893_vm2, %v890_v37 }
 0x178 PF: > { %s12_s11 = sadd.s32 1, %s1217_s11   ;;  %s1349_s9 = smov %s1213_s10 }
 0x179   : > { %p9_p5 = scmp.ge.s32.totalorder %s12_s11, 6   ;;  %s1350_s10 = smov %s1352_s12 }
 0x17b   :  { %11 = sbr.rel (!%p9_p5) target bundleno = 2 (0x2), region = 68 }

</bundles_post_ra>
